<compile_context>
chip_gen: v5e
topology: v5e:2x2
jax: 0.10.0
libtpu: 0.0.40
codegen_flags: <defaults>
</compile_context>

<pallas_src>
import jax
import jax.numpy as jnp
from jax.experimental import pallas as pl
from jax.experimental.pallas import tpu as pltpu

# Conv hyper-parameters fixed by the module definition.
K1, S1 = 10, 10        # conv1 kernel / stride along H
C1 = 64                # conv1 out channels
K2, S2 = 5, 5          # conv2 kernel / stride along (already strided) H
C2 = 128               # conv2 out channels
WIN = K1 * K2          # 50 input samples per output timestep
HID = K2 * C1          # 320 concatenated conv1 activations per timestep


def axis_block_kernel(x_ref, w1_ref, b1_ref, w2_ref, b2_ref, o_ref):
    """Fused conv1+ReLU+conv2+ReLU on a block of output rows.

    x_ref : (RB, 50)   f32  one 50-sample input window per output timestep
    w1_ref: (50, 320)  bf16 block-diagonal conv1 weight
    b1_ref: (1, 320)   f32  conv1 bias tiled over the 5 taps
    w2_ref: (320, 128) bf16 conv2 weight as a single matmul
    b2_ref: (1, 128)   f32
    o_ref : (RB, 128)  f32
    """
    x = x_ref[...].astype(jnp.bfloat16)                       # MXU-native input
    h = jnp.dot(x, w1_ref[...], preferred_element_type=jnp.float32)
    h = jnp.maximum(h + b1_ref[...], 0.0)                     # conv1 bias + ReLU
    out = jnp.dot(h.astype(jnp.bfloat16), w2_ref[...],
                  preferred_element_type=jnp.float32)
    o_ref[...] = jnp.maximum(out + b2_ref[...], 0.0)          # conv2 bias + ReLU


def axis_block_forward(x_nchw, w1, b1, w2, b2, *, rows_per_step=512):
    """x_nchw: (B, 1, H, 1) float32, H % 50 == 0.  Returns (B, H//50, 128, 1)."""
    B, Cin, H, W = x_nchw.shape
    assert Cin == 1 and W == 1 and H % WIN == 0
    T2 = H // WIN
    R = B * T2                                   # total output timesteps (rows)

    # Free reshape (no transpose, no extra HBM pass): one row per timestep.
    xf = x_nchw.reshape(R, WIN)

    # conv1 weight (C1,1,K1,1) -> block-diagonal (50, 320) matmul weight:
    #   w1bd[kh*K1 + k, kh*C1 + c] = w1[c, 0, k, 0]
    w1m = jnp.transpose(w1[:, 0, :, 0], (1, 0))                    # (K1, C1)
    w1bd = jnp.kron(jnp.eye(K2, dtype=w1m.dtype), w1m).astype(jnp.bfloat16)
    b1t = jnp.tile(b1, (K2,)).reshape(1, HID).astype(jnp.float32)  # (1, 320)
    # conv2 weight (C2,C1,K2,1) -> (320, 128): w2m[kh*C1 + c, o] = w2[o,c,kh,0]
    w2m = jnp.transpose(w2[:, :, :, 0], (2, 1, 0)).reshape(HID, C2)
    w2m = w2m.astype(jnp.bfloat16)
    b2m = b2.reshape(1, C2).astype(jnp.float32)

    # Row blocking: rows padded so the block is a multiple of 8 (sublane) and
    # the grid tiles evenly.  RB=512 keeps each step's buffers well under the
    # scoped VMEM limit on v5e/v6e/v7x while amortizing per-step overhead.
    rp8 = ((R + 7) // 8) * 8
    RB = min(rows_per_step, rp8)
    Rp = ((rp8 + RB - 1) // RB) * RB
    if Rp != R:
        xf = jnp.pad(xf, ((0, Rp - R), (0, 0)))

    out = pl.pallas_call(
        axis_block_kernel,
        out_shape=jax.ShapeDtypeStruct((Rp, C2), jnp.float32),
        grid=(Rp // RB,),
        in_specs=[
            pl.BlockSpec((RB, WIN), lambda r: (r, 0)),     # x rows
            pl.BlockSpec((WIN, HID), lambda r: (0, 0)),    # w1 (block-diag)
            pl.BlockSpec((1, HID), lambda r: (0, 0)),      # b1 (tiled)
            pl.BlockSpec((HID, C2), lambda r: (0, 0)),     # w2
            pl.BlockSpec((1, C2), lambda r: (0, 0)),       # b2
        ],
        out_specs=pl.BlockSpec((RB, C2), lambda r: (r, 0)),
        compiler_params=pltpu.CompilerParams(
            dimension_semantics=("parallel",)),
    )(xf, w1bd, b1t, w2m, b2m)

    # torch: squeeze(-1).transpose(1,2).unsqueeze(-1) -> (B, T2, C2, 1)
    return out[:R].reshape(B, T2, C2)[..., None]


def reference(x_nchw, w1, b1, w2, b2):
    """Plain-JAX f32 reference of the PyTorch forward, for verification."""
    B, _, H, _ = x_nchw.shape
    T1, T2 = H // S1, H // (S1 * S2)
    xr = x_nchw[:, 0, :, 0].reshape(B, T1, K1)
    h1 = jax.nn.relu(jnp.einsum('btk,ok->bto', xr, w1[:, 0, :, 0]) + b1)
    h1r = h1.reshape(B, T2, K2, C1)
    h2 = jax.nn.relu(
        jnp.einsum('btkc,ock->bto', h1r, w2[:, :, :, 0]) + b2)
    return h2[..., None]


if __name__ == "__main__":
    key = jax.random.PRNGKey(0)
    kx, kw1, kb1, kw2, kb2 = jax.random.split(key, 5)

    # Deterministic synthetic parameters (PyTorch conv weight layouts).
    w1 = jax.random.normal(kw1, (C1, 1, K1, 1), jnp.float32) * 0.1
    b1 = jax.random.normal(kb1, (C1,), jnp.float32) * 0.1
    w2 = jax.random.normal(kw2, (C2, C1, K2, 1), jnp.float32) * 0.05
    b2 = jax.random.normal(kb2, (C2,), jnp.float32) * 0.1

    # Case 1: B=2, H=400  -> T2=8, rows=16 (no padding path).
    B, H = 2, 400
    x = jax.random.normal(kx, (B, 1, H, 1), jnp.float32)
    out = axis_block_forward(x, w1, b1, w2, b2)
    jax.block_until_ready(out)
    ref = reference(x, w1, b1, w2, b2)
    assert out.shape == (B, H // WIN, C2, 1), out.shape
    # bf16 MXU inputs vs f32 reference -> slightly loosened tolerance.
    assert jnp.allclose(out, ref, atol=3e-2, rtol=3e-2)

    # Case 2: B=3, H=350 -> T2=7, rows=21 (exercises the row-padding path).
    B2, H2 = 3, 350
    x2 = jax.random.normal(jax.random.fold_in(kx, 1), (B2, 1, H2, 1), jnp.float32)
    out2 = axis_block_forward(x2, w1, b1, w2, b2)
    jax.block_until_ready(out2)
    ref2 = reference(x2, w1, b1, w2, b2)
    assert out2.shape == (B2, H2 // WIN, C2, 1), out2.shape
    assert jnp.allclose(out2, ref2, atol=3e-2, rtol=3e-2)

    print("KERNEL_OK")
</pallas_src>

<mosaic_0001>
module attributes {stable_mosaic.version = 11 : i64} {
  func.func @axis_block_kernel(%arg0: i32, %arg1: memref<16x50xf32, #tpu.memory_space<vmem>>, %arg2: memref<50x320xbf16, #tpu.memory_space<vmem>>, %arg3: memref<1x320xf32, #tpu.memory_space<vmem>>, %arg4: memref<320x128xbf16, #tpu.memory_space<vmem>>, %arg5: memref<1x128xf32, #tpu.memory_space<vmem>>, %arg6: memref<16x128xf32, #tpu.memory_space<vmem>>) attributes {dimension_semantics = [#tpu.dimension_semantics<parallel>], iteration_bounds = array<i64: 1>, scalar_prefetch = 0 : i64, scratch_operands = 0 : i64, tpu.core_type = #tpu.core_type<tc>, window_params = [{transform_indices = @transform_0, window_bounds = array<i64: 16, 50>}, {pipeline_mode = #tpu.pipeline_mode<synchronous>, transform_indices = @transform_1, window_bounds = array<i64: 50, 320>}, {pipeline_mode = #tpu.pipeline_mode<synchronous>, transform_indices = @transform_2, window_bounds = array<i64: 1, 320>}, {pipeline_mode = #tpu.pipeline_mode<synchronous>, transform_indices = @transform_3, window_bounds = array<i64: 320, 128>}, {pipeline_mode = #tpu.pipeline_mode<synchronous>, transform_indices = @transform_4, window_bounds = array<i64: 1, 128>}, {transform_indices = @transform_5, window_bounds = array<i64: 16, 128>}]} {
    %c0 = arith.constant 0 : index
    %c0_0 = arith.constant 0 : index
    %0 = vector.load %arg1[%c0, %c0_0] : memref<16x50xf32, #tpu.memory_space<vmem>>, vector<16x50xf32>
    %1 = arith.truncf %0 : vector<16x50xf32> to vector<16x50xbf16>
    %c0_1 = arith.constant 0 : index
    %c0_2 = arith.constant 0 : index
    %2 = vector.load %arg2[%c0_1, %c0_2] : memref<50x320xbf16, #tpu.memory_space<vmem>>, vector<50x320xbf16>
    %cst = arith.constant dense<0.000000e+00> : vector<16x320xf32>
    %3 = tpu.matmul %1, %2, %cst {dimension_numbers = #tpu.dot_dimension_numbers<[1], [0], [0], [1], [0, 0, 1, 1], [], []>} : vector<16x50xbf16>, vector<50x320xbf16>, vector<16x320xf32> -> vector<16x320xf32>
    %c0_3 = arith.constant 0 : index
    %c0_4 = arith.constant 0 : index
    %4 = vector.load %arg3[%c0_3, %c0_4] : memref<1x320xf32, #tpu.memory_space<vmem>>, vector<1x320xf32>
    %5 = vector.broadcast %4 : vector<1x320xf32> to vector<16x320xf32>
    %6 = arith.addf %3, %5 : vector<16x320xf32>
    %cst_5 = arith.constant 0.000000e+00 : f32
    %7 = vector.broadcast %cst_5 : f32 to vector<16x320xf32>
    %8 = arith.maximumf %6, %7 : vector<16x320xf32>
    %9 = arith.truncf %8 : vector<16x320xf32> to vector<16x320xbf16>
    %c0_6 = arith.constant 0 : index
    %c0_7 = arith.constant 0 : index
    %10 = vector.load %arg4[%c0_6, %c0_7] : memref<320x128xbf16, #tpu.memory_space<vmem>>, vector<320x128xbf16>
    %cst_8 = arith.constant dense<0.000000e+00> : vector<16x128xf32>
    %11 = tpu.matmul %9, %10, %cst_8 {dimension_numbers = #tpu.dot_dimension_numbers<[1], [0], [0], [1], [0, 0, 1, 1], [], []>} : vector<16x320xbf16>, vector<320x128xbf16>, vector<16x128xf32> -> vector<16x128xf32>
    %c0_9 = arith.constant 0 : index
    %c0_10 = arith.constant 0 : index
    %12 = vector.load %arg5[%c0_9, %c0_10] : memref<1x128xf32, #tpu.memory_space<vmem>>, vector<1x128xf32>
    %13 = vector.broadcast %12 : vector<1x128xf32> to vector<16x128xf32>
    %14 = arith.addf %11, %13 : vector<16x128xf32>
    %cst_11 = arith.constant 0.000000e+00 : f32
    %15 = vector.broadcast %cst_11 : f32 to vector<16x128xf32>
    %16 = arith.maximumf %14, %15 : vector<16x128xf32>
    %c0_12 = arith.constant 0 : index
    %c0_13 = arith.constant 0 : index
    %17 = vector.load %arg6[%c0_12, %c0_13] : memref<16x128xf32, #tpu.memory_space<vmem>>, vector<16x128xf32>
    tpu.vector_store %arg6[%c0_12, %c0_13], %16 {strides = array<i32>} : memref<16x128xf32, #tpu.memory_space<vmem>>, vector<16x128xf32>,
    return
  }
  func.func @transform_0(%arg0: i32) -> (i32, i32) {
    %c0_i32 = arith.constant 0 : i32
    %c0_i32_0 = arith.constant 0 : i32
    return %arg0, %c0_i32 : i32, i32
  }
  func.func @transform_1(%arg0: i32) -> (i32, i32) {
    %c0_i32 = arith.constant 0 : i32
    %c0_i32_0 = arith.constant 0 : i32
    %c0_i32_1 = arith.constant 0 : i32
    return %c0_i32, %c0_i32_0 : i32, i32
  }
  func.func @transform_2(%arg0: i32) -> (i32, i32) {
    %c0_i32 = arith.constant 0 : i32
    %c0_i32_0 = arith.constant 0 : i32
    %c0_i32_1 = arith.constant 0 : i32
    return %c0_i32, %c0_i32_0 : i32, i32
  }
  func.func @transform_3(%arg0: i32) -> (i32, i32) {
    %c0_i32 = arith.constant 0 : i32
    %c0_i32_0 = arith.constant 0 : i32
    %c0_i32_1 = arith.constant 0 : i32
    return %c0_i32, %c0_i32_0 : i32, i32
  }
  func.func @transform_4(%arg0: i32) -> (i32, i32) {
    %c0_i32 = arith.constant 0 : i32
    %c0_i32_0 = arith.constant 0 : i32
    %c0_i32_1 = arith.constant 0 : i32
    return %c0_i32, %c0_i32_0 : i32, i32
  }
  func.func @transform_5(%arg0: i32) -> (i32, i32) {
    %c0_i32 = arith.constant 0 : i32
    %c0_i32_0 = arith.constant 0 : i32
    return %arg0, %c0_i32 : i32, i32
  }
}

</mosaic_0001>

<bundles_post_ra>
// kernel: tpu_custom_call.1
= control target key start
LH: loop header
LB: loop body
LE: loop exit
PB: predicated region body
PF: predicated region fallthrough
CT: control target
= control target key end

     0   :  { %10 = vsyncpa [#allocation3], 0  ;;  %s824_s0 = inlined_call_operand.hbm [shape: f32[16,50], index: 0, kind: input, shape index: {}]   ;;  %s825_s1 = inlined_call_operand.hbm [shape: bf16[50,320], index: 1, kind: input, shape index: {}]   ;;  %s826_s2 = inlined_call_operand.hbm [shape: f32[1,320], index: 2, kind: input, shape index: {}]   ;;  %s827_s3 = inlined_call_operand.hbm [shape: bf16[320,128], index: 3, kind: input, shape index: {}]   ;;  %s828_s4 = inlined_call_operand.vmem [shape: f32[1,128], index: 4, kind: input, shape index: {}]   ;;  %s829_s5 = inlined_call_operand.hbm [shape: f32[16,128], index: 5, kind: output, shape index: {}]  }
   0x1   :  { %11 = vsyncpa [#allocation6], 0 }
   0x2   :  { %12 = vsyncpa [#allocation9], 0  ;;  %s31_s20 = sshll.u32 %s825_s1, 4  ;;  %s32_s20 = int_to_ptr.hbm [resolvable:$true] %s31_s20 }
   0x3   :  { %13 = vsyncpa [#allocation4], 0  ;;  %s753_s21 = smov [#allocation5]   ;;  %s18_s25 = sshll.u32 %s824_s0, 4  ;;  %s19_s25 = int_to_ptr.hbm [resolvable:$true] %s18_s25 }
   0x4   :  { %s33_s22 = sshll.u32 %s753_s21, 4  ;;  %s754_s26 = smov 192   ;;  %s34_s22 = int_to_ptr.vmem [resolvable:$true] %s33_s22 }
   0x5   :  { %s755_s27 = smov 12   ;;  %s756_s28 = smov [#allocation2]  }
   0x6   :  { %39 = dma.hbm_to_vmem [thread:$0]  %s32_s20, 1344, %s34_s22, [#allocation6], %s754_s26, %s754_s26, %s755_s27  }
   0x7   :  { %s20_s29 = sshll.u32 %s756_s28, 4  ;;  %s757_s30 = smov 128   ;;  %s21_s29 = int_to_ptr.vmem [resolvable:$true] %s20_s29 }
   0x8   :  { %s758_s6 = smov 8   ;;  %s45_s8 = sshll.u32 %s826_s2, 4  ;;  %s46_s8 = int_to_ptr.hbm [resolvable:$true] %s45_s8 }
   0x9   :  { %26 = dma.hbm_to_vmem [thread:$0]  %s19_s25, 256, %s21_s29, [#allocation3], %s757_s30, %s757_s30, %s758_s6  }
   0xa   :  { %s759_s9 = smov [#allocation7]   ;;  %s55_s12 = sshll.u32 %s827_s3, 4  ;;  %s56_s12 = int_to_ptr.hbm [resolvable:$true] %s55_s12 }
   0xb   :  { %s47_s0 = sshll.u32 %s759_s9, 4  ;;  %s760_s13 = smov [#allocation8]   ;;  %s48_s0 = int_to_ptr.vmem [resolvable:$true] %s47_s0 }
   0xc   :  { %50 = dma.hbm_to_vmem [thread:$0]  %s46_s8, 48, %s48_s0, [#allocation6]  }
   0xd   :  { %s57_s14 = sshll.u32 %s760_s13, 4  ;;  %s761_s15 = smov 64   ;;  %s58_s14 = int_to_ptr.vmem [resolvable:$true] %s57_s14 }
   0xe   :  { %s762_s16 = smov 4  }
   0xf   :  { %63 = dma.hbm_to_vmem [thread:$0]  %s56_s12, 2560, %s58_s14, [#allocation9], %s761_s15, %s761_s15, %s762_s16  }
  0x10   :  { %745 = dma.done.wait [#allocation3], 256  }
  0x11   :  { %746 = vsyncadd [#allocation3], 4294967040 }
  0x12   :  { %747 = dma.done.wait [#allocation6], 1392  }
  0x13   :  { %748 = vsyncadd [#allocation6], 4294965904 }
  0x14   :  { %749 = dma.done.wait [#allocation9], 2560  }
  0x15   :  { %750 = vsyncadd [#allocation9], 4294964736  ;;  %v98_v0 = vld [vmem:[#allocation5 + $0x48] sm:$0x11]  ;;  %vm168_vm0 = vcmask 1040384   ;;  %v608_v18 = vld [vmem:[#allocation8 + $0x78] sm:$0xff] }
  0x16   :  { %v140_v1 = vunpack.c.l.b16 %v98_v0  ;;  %v141_v2 = vunpack.c.h.b16 %v98_v0  ;;  %v490_v3 = vld [vmem:[#allocation5 + $0x30] sm:$0xf]  ;;  %v591_v5 = vld [vmem:[#allocation5 + $0x38] sm:$0xf0]  ;;  %v590_v7 = vld [vmem:[#allocation5 + $0x34] sm:$0xf]  ;;  %411 = vmatpush.bf16.msra.mxu0 %v608_v18 }
  0x17   :  { %v492_v8 = vld [vmem:[#allocation5 + $0x3c] sm:$0xf0]  ;;  %v99_v11 = vld [vmem:[#allocation5 + $0x50] sm:$0x1]  ;;  %v491_v12 = vor.u32 %v591_v5, %v490_v3  ;;  %v478_v13 = vld [vmem:[#allocation5 + $0x18] sm:$0xf] }
  0x18   :  { %v152_v4 = vpack.c.b16 %v140_v1, %v140_v1  ;;  %v153_v6 = vpack.c.b16 %v141_v2, %v141_v2  ;;  %v588_v14 = vld [vmem:[#allocation5 + $0x20] sm:$0xf0]  ;;  %v495_v15 = vor.u32 %v590_v7, %v492_v8  ;;  %v587_v16 = vld [vmem:[#allocation5 + $0x1c] sm:$0xf]  ;;  %v480_v17 = vld [vmem:[#allocation5 + $0x24] sm:$0xf0]  ;;  %v142_v19 = vunpack.c.l.b16 %v99_v11 }
  0x19   :  { %v600_v20 = vld [vmem:[#allocation8 + $0x38] sm:$0xff]  ;;  %v607_v21 = vld [vmem:[#allocation8 + $0x70] sm:$0xff]  ;;  %v479_v22 = vor.u32 %v588_v14, %v478_v13  ;;  %v466_v23 = vld [vmem:[#allocation5] sm:$0xf]  ;;  %v483_v25 = vor.u32 %v587_v16, %v480_v17  ;;  %vm164_vm1 = vcmask 408576   ;;  %vm393_vm2 = vcmask 523264  }
  0x1a   :  { %v170_v9 = vsel %vm168_vm0, %v152_v4, 0  ;;  %v173_v10 = vsel %vm168_vm0, %v153_v6, 0  ;;  %v585_v24 = vld [vmem:[#allocation5 + $0x8] sm:$0xf0]  ;;  %v584_v26 = vld [vmem:[#allocation5 + $0x4] sm:$0xf]  ;;  %397 = vmatpush.bf16.msra.mxu3 %v600_v20  ;;  %v154_v29 = vpack.c.b16 %v142_v19, %v142_v19  ;;  %412 = vmatpush.bf16.msra.mxu0 %v607_v21 }
  0x1b   :  { %182 = vmatpush.bf16.msra.mxu2 %v170_v9  ;;  %196 = vmatpush.bf16.msra.mxu1 %v173_v10  ;;  %v468_v27 = vld [vmem:[#allocation5 + $0xc] sm:$0xf0]  ;;  %v599_v28 = vld [vmem:[#allocation8 + $0x30] sm:$0xff]  ;;  %v606_v30 = vld [vmem:[#allocation8 + $0x68] sm:$0xff]  ;;  %v467_v31 = vor.u32 %v585_v24, %v466_v23  ;;  %s763_s17 = smov [#allocation10]   ;;  %s449_s21 = sshll.u32 %s829_s5, 4  ;;  %s450_s21 = int_to_ptr.hbm [resolvable:$true] %s449_s21 }
  0x1c   :  { %v83_v32 = vld [vmem:[#allocation2] sm:$0xff]  ;;  %v84_v33 = vld [vmem:[#allocation2 + $0x8] sm:$0xff]  ;;  %v471_v34 = vor.u32 %v584_v26, %v468_v27  ;;  %v598_v35 = vld [vmem:[#allocation8 + $0x28] sm:$0xff]  ;;  %v176_v36 = vsel %vm168_vm0, %v154_v29, 0  ;;  %s447_s18 = sshll.u32 %s763_s17, 4  ;;  %s448_s18 = int_to_ptr.vmem [resolvable:$true] %s447_s18 }
  0x1d   :  { %v498_v37 = vld [vmem:[#allocation5 + $0x38] sm:$0xf]  ;;  %v592_v38 = vld [vmem:[#allocation5 + $0x40] sm:$0xf0]  ;;  %v85_v39 = vpack.c.bf16 %v84_v33, %v83_v32  ;;  %v486_v43 = vld [vmem:[#allocation5 + $0x20] sm:$0xf] }
  0x1e   :  { %398 = vmatpush.bf16.msra.mxu3 %v599_v28  ;;  %413 = vmatpush.bf16.msra.mxu0 %v606_v30  ;;  %v605_v40 = vld [vmem:[#allocation8 + $0x60] sm:$0xff]  ;;  %v499_v41 = vor.u32 %v592_v38, %v498_v37  ;;  %v589_v44 = vld [vmem:[#allocation5 + $0x28] sm:$0xf0]  ;;  %v474_v46 = vld [vmem:[#allocation5 + $0x8] sm:$0xf] }
  0x1f   :  { %183 = vmatpush.bf16.msra.mxu2 %v491_v12  ;;  %197 = vmatpush.bf16.msra.mxu1 %v495_v15  ;;  %v597_v42 = vld [vmem:[#allocation8 + $0x20] sm:$0xff]  ;;  %v487_v45 = vor.u32 %v589_v44, %v486_v43  ;;  %v586_v47 = vld [vmem:[#allocation5 + $0x10] sm:$0xf0]  ;;  %v603_v51 = vld [vmem:[#allocation8 + $0x50] sm:$0xff] }
  0x20   :  { %v475_v48 = vor.u32 %v586_v47, %v474_v46  ;;  %v604_v49 = vld [vmem:[#allocation8 + $0x58] sm:$0xff]  ;;  %v595_v52 = vld [vmem:[#allocation8 + $0x10] sm:$0xff]  ;;  %v602_v53 = vld [vmem:[#allocation8 + $0x48] sm:$0xff] }
  0x21   :  { %v596_v50 = vld [vmem:[#allocation8 + $0x18] sm:$0xff]  ;;  %v594_v54 = vld [vmem:[#allocation8 + $0x8] sm:$0xff]  ;;  %v601_v55 = vld [vmem:[#allocation8 + $0x40] sm:$0xff] }
  0x22   :  { %399 = vmatpush.bf16.msra.mxu3 %v598_v35  ;;  %414 = vmatpush.bf16.msra.mxu0 %v605_v40  ;;  %v593_v56 = vld [vmem:[#allocation8] sm:$0xff]  ;;  %v612_v57 = vld [vmem:[#allocation8 + $0x98] sm:$0xff]  ;;  %v611_v58 = vld [vmem:[#allocation8 + $0x90] sm:$0xff] }
  0x23   :  { %184 = vmatpush.bf16.msra.mxu2 %v479_v22  ;;  %198 = vmatpush.bf16.msra.mxu1 %v483_v25  ;;  %v610_v59 = vld [vmem:[#allocation8 + $0x88] sm:$0xff]  ;;  %v100_v60 = vld [vmem:[#allocation7] sm:$0x7]  ;;  %v609_v62 = vld [vmem:[#allocation8 + $0x80] sm:$0xff] }
  0x24   :  { %v103_v63 = vperm.slane %v100_v60, 1  ;;  %v102_v4 = vperm.slane %v100_v60, 0  ;;  %v104_v15 = vperm.slane %v100_v60, 2  ;;  %v624_v23 = vld [vmem:[%s828_s4] ss:$0 sm:$0xff] }
  0x26   :  { %400 = vmatpush.bf16.msra.mxu3 %v597_v42  ;;  %415 = vmatpush.bf16.msra.mxu0 %v604_v49 }
  0x27   :  { %185 = vmatpush.bf16.msra.mxu2 %v467_v31  ;;  %199 = vmatpush.bf16.msra.mxu1 %v471_v34 }
  0x2a   :  { %500 = vmatmul.msk.bf16.vlgmr.msra.gmra.mxu2 %vm164_vm1, %v85_v39  ;;  %501 = vmatmul.msk.bf16.vlgmr.msra.gmra.mxu1 %vm164_vm1, %v85_v39 }
  0x2b   :  { %210 = vmatpush.bf16.msrb.mxu2 %v176_v36  ;;  %401 = vmatpush.bf16.msra.mxu3 %v596_v50 }
  0x2c   :  { %416 = vmatpush.bf16.msra.mxu0 %v603_v51  ;;  %429 = vmatpush.bf16.msrb.mxu1 %v612_v57 }
  0x2f   :  { %211 = vmatpush.bf16.msrb.mxu2 %v499_v41  ;;  %402 = vmatpush.bf16.msra.mxu3 %v595_v52 }
  0x30   :  { %417 = vmatpush.bf16.msra.mxu0 %v602_v53  ;;  %430 = vmatpush.bf16.msrb.mxu1 %v611_v58 }
  0x33   :  { %212 = vmatpush.bf16.msrb.mxu2 %v487_v45  ;;  %403 = vmatpush.bf16.msra.mxu3 %v594_v54 }
  0x34   :  { %418 = vmatpush.bf16.msra.mxu0 %v601_v55  ;;  %431 = vmatpush.bf16.msrb.mxu1 %v610_v59 }
  0x37   :  { %213 = vmatpush.bf16.msrb.mxu2 %v475_v48  ;;  %404 = vmatpush.bf16.msra.mxu3 %v593_v56 }
  0x38   :  { %432 = vmatpush.bf16.msrb.mxu1 %v609_v62 }
  0x3a   :  { %502 = vmatmul.msk.bf16.vlgmr.msrb.gmra.mxu2 %vm164_vm1, %v85_v39 }
  0xa7   :  { %v201_v61 = vpop.f32.mrf.mxu1 }
  0xa8   :  { %v202_v0 = vadd.f32 %v201_v61, %v103_v63 }
  0xaa   :  { %v221_v3 = vmax.f32 %v202_v0, 0.0 }
  0xad   :  { %v187_v1 = vpop.f32.mrf.mxu2 }
  0xae   :  { %v188_v7 = vadd.f32 %v187_v1, %v102_v4 }
  0xaf   :  { %v203_v2 = vpop.f32.mrf.mxu1 }
  0xb0   :  { %v204_v5 = vadd.f32 %v203_v2, %v103_v63  ;;  %v220_v11 = vmax.f32 %v188_v7, 0.0 }
  0xb2   :  { %v224_v6 = vmax.f32 %v204_v5, 0.0 }
  0xb4   :  { %v227_v8 = vpack.c.bf16 %v224_v6, %v221_v3 }
  0xb5   :  { %v189_v9 = vpop.f32.mrf.mxu2 }
  0xb6   :  { %v190_v10 = vadd.f32 %v189_v9, %v102_v4  ;;  %419 = vmatmul.bf16.vlgmr.msra.gmra.mxu0 %v227_v8 }
  0xb8   :  { %v223_v12 = vmax.f32 %v190_v10, 0.0 }
  0xba   :  { %v226_v13 = vpack.c.bf16 %v223_v12, %v220_v11 }
  0xbc   :  { %405 = vmatmul.bf16.vlgmr.msra.gmra.mxu3 %v226_v13 }
  0xbd   :  { %v215_v14 = vpop.f32.mrf.mxu2 }
  0xbe   :  { %v216_v16 = vadd.f32 %v215_v14, %v104_v15 }
  0xc0   :  { %v222_v19 = vmax.f32 %v216_v16, 0.0 }
  0xc5   :  { %v217_v17 = vpop.f32.mrf.mxu2 }
  0xc6   :  { %v218_v18 = vadd.f32 %v217_v17, %v104_v15 }
  0xc8   :  { %v225_v20 = vmax.f32 %v218_v18, 0.0 }
  0xca   :  { %v228_v21 = vpack.c.bf16 %v225_v20, %v222_v19 }
  0xcc   :  { %583 = vmatmul.msk.bf16.vlgmr.msrb.gmra.mxu1 %vm393_vm2, %v228_v21 }
 0x133   :  { %v420_v25 = vpop.f32.mrf.mxu0 }
 0x13b   :  { %v422_v32 = vpop.f32.mrf.mxu0 }
 0x13f   :  { %v406_v22 = vpop.f32.mrf.mxu3 }
 0x140   :  { %v407_v24 = vadd.f32 %v624_v23, %v406_v22 }
 0x142   :  { %v421_v26 = vadd.f32 %v420_v25, %v407_v24 }
 0x147   :  { %v408_v27 = vpop.f32.mrf.mxu3 }
 0x148   :  { %v409_v30 = vadd.f32 %v624_v23, %v408_v27 }
 0x149   :  { %v434_v28 = vpop.f32.mrf.mxu1 }
 0x14a   :  { %v435_v29 = vadd.f32 %v434_v28, %v421_v26  ;;  %v423_v33 = vadd.f32 %v422_v32, %v409_v30 }
 0x14c   :  { %v439_v31 = vmax.f32 %v435_v29, 0.0 }
 0x14e   :  { %441 = vst [vmem:[#allocation10] sm:$0xff] %v439_v31 }
 0x151   :  { %v436_v34 = vpop.f32.mrf.mxu1 }
 0x152   :  { %v437_v35 = vadd.f32 %v436_v34, %v423_v33 }
 0x154   :  { %v440_v36 = vmax.f32 %v437_v35, 0.0 }
 0x156   :  { %442 = vst [vmem:[#allocation10 + $0x8] sm:$0xff] %v440_v36 }
 0x157   :  { %455 = dma.vmem_to_hbm [thread:$0]  %s448_s18, 256, %s450_s21, [#allocation4], %s757_s30, %s757_s30, %s758_s6  }
 0x158   :  { %751 = dma.done.wait [#allocation4], 256  }
 0x159   :  { %752 = vsyncadd [#allocation4], 4294967040 }
 0x15a   :  { %460 = vsyncpa [#allocation3], 1 }
 0x15b   :  { %461 = vsyncpa [#allocation6], 1 }
 0x15c   :  { %462 = vsyncpa [#allocation9], 1 }
 0x15d   :  { %463 = vsyncpa [#allocation4], 1 }

</bundles_post_ra>
